<compile_context>
chip_gen: v7x
topology: tpu7x:2x2x1
jax: 0.10.0
libtpu: 0.0.40
codegen_flags: <defaults>
</compile_context>

<pallas_src>
import jax
import jax.numpy as jnp
from jax.experimental import pallas as pl
from jax.experimental.pallas import tpu as pltpu


_VMEM_LIMIT_BYTES = 32 * 1024 * 1024    # requested scoped VMEM (safe on v5e/v6e/v7x)
_VMEM_BUDGET_BYTES = 20 * 1024 * 1024   # budget for double-buffered tiles, with headroom


def _sigmoid_exact(z):
    # Exact divide: mem-bound kernel, so the Newton-refined reciprocal is free.
    return 1.0 / (1.0 + jnp.exp(-z))


def _logreg_o1_kernel(x_ref, w_ref, b_ref, o_ref):
    # x_ref: (TM, D) VMEM | w_ref: (1, D) VMEM (resident) | b_ref: (1,) SMEM | o_ref: (TM, 1)
    x = x_ref[...]
    w = w_ref[...]
    # VPU broadcast-mul + XLU lane-reduce; accumulate in f32 (no MXU for a 1-column matmul).
    z = jnp.sum((x * w).astype(jnp.float32), axis=-1, keepdims=True)
    z = z + b_ref[0]
    o_ref[...] = _sigmoid_exact(z).astype(o_ref.dtype)


def _logreg_mxu_kernel(x_ref, wt_ref, b_ref, o_ref):
    # x_ref: (TM, D) | wt_ref: (D, O) pre-transposed once in the wrapper | b_ref: (1, O) | o_ref: (TM, O)
    z = jnp.dot(x_ref[...], wt_ref[...], preferred_element_type=jnp.float32)
    z = z + b_ref[...]
    o_ref[...] = _sigmoid_exact(z).astype(o_ref.dtype)


def _choose_tm(B, D, O, itemsize):
    """Pick a batch-tile size that fits the VMEM budget and keeps >=2 grid steps
    when the batch is big enough (v7x has 2 TensorCores)."""
    per_row = 2 * (D + O) * itemsize              # double-buffered x tile + output tile
    cap = max(8, (_VMEM_BUDGET_BYTES // per_row) // 8 * 8)
    tm = min(1024, cap)                           # large tiles -> HBM-roofline plateau
    if B <= tm:
        if B >= 16:
            # Split the batch into (at least) two tiles so a 2-TC chip can shard it.
            tm = min(tm, ((B + 1) // 2 + 7) // 8 * 8)
        else:
            tm = B                                # full-extent block (no (8,128) issue)
    return tm


def logistic_regression_forward(x, weight, bias):
    """Equivalent of LogisticRegressionModel.forward.

    x: (B, ...) float array, flattened from dim 1 (same order as torch.flatten(start_dim=1)).
    weight: (O, D) as stored by nn.Linear.  bias: (O,).
    Returns (B, O) sigmoid(x_flat @ weight.T + bias).
    """
    B = x.shape[0]
    x_flat = x.reshape(B, -1)
    D = x_flat.shape[1]
    O = weight.shape[0]
    itemsize = jnp.dtype(x_flat.dtype).itemsize

    TM = _choose_tm(B, D, O, itemsize)
    grid = (pl.cdiv(B, TM),)   # no host-side pad: Pallas masks the partial final block

    cparams = pltpu.CompilerParams(
        dimension_semantics=("parallel",),
        vmem_limit_bytes=_VMEM_LIMIT_BYTES,
    )

    if O == 1:
        # Fast path: no MXU, weight resident in VMEM, bias as an SMEM scalar.
        out = pl.pallas_call(
            _logreg_o1_kernel,
            out_shape=jax.ShapeDtypeStruct((B, 1), x_flat.dtype),
            grid_spec=pltpu.PrefetchScalarGridSpec(
                num_scalar_prefetch=0,
                grid=grid,
                in_specs=[
                    pl.BlockSpec((TM, D), lambda i: (i, 0)),            # streamed x tile
                    pl.BlockSpec((1, D), lambda i: (0, 0)),             # resident weight
                    pl.BlockSpec(memory_space=pltpu.MemorySpace.SMEM),  # bias scalar
                ],
                out_specs=pl.BlockSpec((TM, 1), lambda i: (i, 0)),
            ),
            compiler_params=cparams,
        )(x_flat, weight, bias)
    else:
        # One-time (O, D) -> (D, O) transpose in HBM; avoids a per-grid-step XLU transpose
        # of the resident weight block inside the kernel.
        w_t = jnp.transpose(weight)
        out = pl.pallas_call(
            _logreg_mxu_kernel,
            out_shape=jax.ShapeDtypeStruct((B, O), x_flat.dtype),
            grid_spec=pltpu.PrefetchScalarGridSpec(
                num_scalar_prefetch=0,
                grid=grid,
                in_specs=[
                    pl.BlockSpec((TM, D), lambda i: (i, 0)),   # streamed x tile
                    pl.BlockSpec((D, O), lambda i: (0, 0)),    # resident transposed weight
                    pl.BlockSpec((1, O), lambda i: (0, 0)),    # bias row
                ],
                out_specs=pl.BlockSpec((TM, O), lambda i: (i, 0)),
            ),
            compiler_params=cparams,
        )(x_flat, w_t, bias.reshape(1, O))
    return out


if __name__ == "__main__":
    key = jax.random.PRNGKey(0)

    # Shapes consistent with the module: x = (B, C, H, W), input_dim = C*H*W, output_dim = 1.
    B, C, H, W = 2, 4, 16, 16
    input_dim = C * H * W

    kx, kw, kb, kx2, kw2, kb2 = jax.random.split(key, 6)
    x = jax.random.normal(kx, (B, C, H, W), dtype=jnp.float32)

    def ref_forward(xv, wv, bv):
        xf = xv.reshape(xv.shape[0], -1)
        z = jnp.dot(xf, wv.T, precision=jax.lax.Precision.HIGHEST) + bv
        return jax.nn.sigmoid(z)

    # 1) nn.init.constant_(..., 0.0): sigmoid(0) = 0.5 everywhere.
    weight0 = jnp.zeros((1, input_dim), dtype=jnp.float32)
    bias0 = jnp.zeros((1,), dtype=jnp.float32)
    out0 = jax.block_until_ready(logistic_regression_forward(x, weight0, bias0))
    assert out0.shape == (B, 1)
    assert jnp.allclose(out0, ref_forward(x, weight0, bias0), atol=1e-5)

    # 2) Random parameters, O == 1 fast path (exact sigmoid -> tight tolerance).
    weight1 = 0.05 * jax.random.normal(kw, (1, input_dim), dtype=jnp.float32)
    bias1 = 0.1 * jax.random.normal(kb, (1,), dtype=jnp.float32)
    out1 = jax.block_until_ready(logistic_regression_forward(x, weight1, bias1))
    assert out1.shape == (B, 1)
    assert jnp.allclose(out1, ref_forward(x, weight1, bias1), atol=1e-5)

    # 3) Larger batch exercising multi-tile grid + masked partial final block (no host pad).
    B2 = 40
    x2 = jax.random.normal(kx2, (B2, C, H, W), dtype=jnp.float32)
    out2 = jax.block_until_ready(logistic_regression_forward(x2, weight1, bias1))
    assert out2.shape == (B2, 1)
    assert jnp.allclose(out2, ref_forward(x2, weight1, bias1), atol=1e-5)

    # 4) Generic output_dim > 1 path (MXU, pre-transposed weight).
    O2 = 3
    weight2 = 0.05 * jax.random.normal(kw2, (O2, input_dim), dtype=jnp.float32)
    bias2 = 0.1 * jax.random.normal(kb2, (O2,), dtype=jnp.float32)
    out3 = jax.block_until_ready(logistic_regression_forward(x, weight2, bias2))
    assert out3.shape == (B, O2)
    assert jnp.allclose(out3, ref_forward(x, weight2, bias2), atol=1e-4)

    print("KERNEL_OK")
</pallas_src>

<mosaic_0001>
module attributes {stable_mosaic.version = 11 : i64} {
  func.func @_logreg_o1_kernel(%arg0: i32, %arg1: memref<2x1024xf32, #tpu.memory_space<vmem>>, %arg2: memref<1x1024xf32, #tpu.memory_space<vmem>>, %arg3: memref<1xf32, #tpu.memory_space<smem>>, %arg4: memref<2x1xf32, #tpu.memory_space<vmem>>) attributes {dimension_semantics = [#tpu.dimension_semantics<parallel>], iteration_bounds = array<i64: 1>, scalar_prefetch = 0 : i64, scratch_operands = 0 : i64, tpu.core_type = #tpu.core_type<tc>, window_params = [{transform_indices = @transform_0, window_bounds = array<i64: 2, 1024>}, {pipeline_mode = #tpu.pipeline_mode<synchronous>, transform_indices = @transform_1, window_bounds = array<i64: 1, 1024>}, {transform_indices = @transform_2, window_bounds = array<i64: 1>}, {transform_indices = @transform_3, window_bounds = array<i64: 2, 1>}]} {
    %c0 = arith.constant 0 : index
    %c0_0 = arith.constant 0 : index
    %0 = vector.load %arg1[%c0, %c0_0] : memref<2x1024xf32, #tpu.memory_space<vmem>>, vector<2x1024xf32>
    %c0_1 = arith.constant 0 : index
    %c0_2 = arith.constant 0 : index
    %1 = vector.load %arg2[%c0_1, %c0_2] : memref<1x1024xf32, #tpu.memory_space<vmem>>, vector<1x1024xf32>
    %2 = vector.broadcast %1 : vector<1x1024xf32> to vector<2x1024xf32>
    %3 = arith.mulf %0, %2 : vector<2x1024xf32>
    %cst = arith.constant dense<0.000000e+00> : vector<2xf32>
    %4 = vector.multi_reduction <add>, %3, %cst [1] : vector<2x1024xf32> to vector<2xf32>
    %5 = vector.shape_cast %4 : vector<2xf32> to vector<2x1xf32>
    %c0_3 = arith.constant 0 : index
    %6 = memref.load %arg3[%c0_3] : memref<1xf32, #tpu.memory_space<smem>>
    %7 = vector.broadcast %6 : f32 to vector<2x1xf32>
    %8 = arith.addf %5, %7 : vector<2x1xf32>
    %cst_4 = arith.constant 0.000000e+00 : f32
    %9 = vector.broadcast %cst_4 : f32 to vector<2x1xf32>
    %10 = arith.subf %9, %8 : vector<2x1xf32>
    %11 = math.exp %10 : vector<2x1xf32>
    %cst_5 = arith.constant 1.000000e+00 : f32
    %12 = vector.broadcast %cst_5 : f32 to vector<2x1xf32>
    %13 = arith.addf %12, %11 : vector<2x1xf32>
    %cst_6 = arith.constant 1.000000e+00 : f32
    %14 = vector.broadcast %cst_6 : f32 to vector<2x1xf32>
    %15 = arith.divf %14, %13 : vector<2x1xf32>
    %c0_7 = arith.constant 0 : index
    %c0_8 = arith.constant 0 : index
    %16 = vector.load %arg4[%c0_7, %c0_8] : memref<2x1xf32, #tpu.memory_space<vmem>>, vector<2x1xf32>
    tpu.vector_store %arg4[%c0_7, %c0_8], %15 {strides = array<i32>} : memref<2x1xf32, #tpu.memory_space<vmem>>, vector<2x1xf32>,
    return
  }
  func.func @transform_0(%arg0: i32) -> (i32, i32) {
    %c0_i32 = arith.constant 0 : i32
    %c0_i32_0 = arith.constant 0 : i32
    return %arg0, %c0_i32 : i32, i32
  }
  func.func @transform_1(%arg0: i32) -> (i32, i32) {
    %c0_i32 = arith.constant 0 : i32
    %c0_i32_0 = arith.constant 0 : i32
    %c0_i32_1 = arith.constant 0 : i32
    return %c0_i32, %c0_i32_0 : i32, i32
  }
  func.func @transform_2(%arg0: i32) -> i32 {
    %c0_i32 = arith.constant 0 : i32
    %c0_i32_0 = arith.constant 0 : i32
    return %c0_i32 : i32
  }
  func.func @transform_3(%arg0: i32) -> (i32, i32) {
    %c0_i32 = arith.constant 0 : i32
    %c0_i32_0 = arith.constant 0 : i32
    return %arg0, %c0_i32 : i32, i32
  }
}

</mosaic_0001>

<bundles_post_ra>
// kernel: tpu_custom_call.1
= control target key start
LH: loop header
LB: loop body
LE: loop exit
PB: predicated region body
PF: predicated region fallthrough
CT: control target
= control target key end

     0   :  { %9 = vsyncpa [#allocation4], 0  ;;  %s308_s0 = inlined_call_operand.hbm [shape: f32[2,1024], index: 0, kind: input, shape index: {}]   ;;  %s309_s1 = inlined_call_operand.hbm [shape: f32[1,1024], index: 1, kind: input, shape index: {}]   ;;  %s310_s2 = inlined_call_operand.<no memory space> [shape: f32[1], index: 2, kind: input, shape index: {}]   ;;  %s311_s3 = inlined_call_operand.vmem [shape: f32[2,1], index: 3, kind: output, shape index: {}]  }
   0x1   :  { %10 = vsyncpa [#allocation6], 0  ;;  %s247_s12 = smov [#allocation3]   ;;  %s248_s14 = smov [#allocation5]  }
   0x2   :  { %s17_s13 = sshll.u32 %s247_s12, 4  ;;  %s27_s15 = sshll.u32 %s248_s14, 4  ;;  %s18_s13 = int_to_ptr.vmem [resolvable:$true] %s17_s13  ;;  %s28_s15 = int_to_ptr.vmem [resolvable:$true] %s27_s15 }
   0x3   :  { %s199_s18 = scalar_lea.hbm %s308_s0, 256 }
   0x4   :  { %p200_p0 = scmp.ne.s32.totalorder %s308_s0, %s199_s18  ;;  %p203_p1 = scmp.lt.u32.totalorder %s199_s18, %s308_s0 }
   0x6   :  { %p205_p2 = pnand %p203_p1, %p200_p0 }
   0x8   :  { %208 = shalt.err (!%p205_p2)
}
   0x9   :  { %s209_s23 = scalar_lea.vmem %s18_s13, 256  ;;  %p214_p4 = scmp.lt.s32.totalorder %s18_s13, %s18_s13 }
   0xa   :  { %p210_p3 = scmp.ne.s32.totalorder %s18_s13, %s209_s23  ;;  %p215_p5 = scmp.lt.s32.totalorder %s209_s23, %s209_s23 }
   0xc   :  { %p216_p6 = por %p215_p5, %p214_p4 }
   0xe   :  { %p217_p7 = pnand %p216_p6, %p210_p3 }
  0x10   :  { %220 = shalt.err (!%p217_p7)
}
  0x11   :  { %20 = dma.hbm_to_vmem [thread:$0]  %s308_s0, 256, %s18_s13, [#allocation4]  }
  0x12   :  { %s221_s28 = scalar_lea.hbm %s309_s1, 128 }
  0x13   :  { %p222_p8 = scmp.ne.s32.totalorder %s309_s1, %s221_s28  ;;  %p225_p9 = scmp.lt.u32.totalorder %s221_s28, %s309_s1 }
  0x15   :  { %p227_p10 = pnand %p225_p9, %p222_p8 }
  0x17   :  { %230 = shalt.err (!%p227_p10)
}
  0x18   :  { %s231_s6 = scalar_lea.vmem %s28_s15, 128  ;;  %p236_p12 = scmp.lt.s32.totalorder %s28_s15, %s28_s15 }
  0x19   :  { %p232_p11 = scmp.ne.s32.totalorder %s28_s15, %s231_s6  ;;  %p237_p13 = scmp.lt.s32.totalorder %s231_s6, %s231_s6 }
  0x1b   :  { %p238_p0 = por %p237_p13, %p236_p12 }
  0x1d   :  { %p239_p1 = pnand %p238_p0, %p232_p11 }
  0x1f   :  { %242 = shalt.err (!%p239_p1)
}
  0x20   :  { %30 = dma.hbm_to_vmem [thread:$0]  %s309_s1, 128, %s28_s15, [#allocation6]  }
  0x21   :  { %243 = dma.done.wait [#allocation4], 256  }
  0x22   :  { %244 = vsyncadd [#allocation4], 4294967040 }
  0x23   :  { %245 = dma.done.wait [#allocation6], 128  }
  0x24   :  { %246 = vsyncadd [#allocation6], 4294967168  ;;  %v43_v0 = vlaneseq  ;;  %v249_v1 = vmov 1983009808   ;;  %v41_v13 = vld [vmem:[#allocation5] sm:$0xff]  ;;  %v39_v29 = vld [vmem:[#allocation3] sm:$0xff]  ;;  %v176_v62 = vstv %s310_s2 }
  0x25   :  { %v78_v2 = vunpack.c.l.s4 %v249_v1  ;;  %v40_v32 = vld [vmem:[#allocation3 + $0x8] sm:$0xff]  ;;  %vm157_vm0 = vcmask 1041408   ;;  %vm184_vm1 = vcmask 1024  }
  0x26   :  { %v44_v3 = vshrl.u32 %v43_v0, 7 }
  0x27   :  { %v79_v4 = vunpack.c.0.s8 %v78_v2 }
  0x28   :  { %v45_v5 = vsub.s32 0, %v44_v3  ;;  %v49_v6 = vsub.s32 1, %v44_v3  ;;  %v53_v7 = vsub.s32 2, %v44_v3  ;;  %v57_v8 = vsub.s32 3, %v44_v3 }
  0x29   :  { %v61_v9 = vsub.s32 4, %v44_v3  ;;  %v65_v10 = vsub.s32 5, %v44_v3  ;;  %v69_v11 = vsub.s32 6, %v44_v3  ;;  %v73_v12 = vsub.s32 7, %v44_v3 }
  0x2a   :  { %v82_v14 = vsub.s32 %v79_v4, %v44_v3  ;;  %v46_v15 = vrot.slane %v41_v13, %v45_v5  ;;  %v50_v16 = vrot.slane %v41_v13, %v49_v6  ;;  %v54_v17 = vrot.slane %v41_v13, %v53_v7 }
  0x2b   :  { %v58_v18 = vrot.slane %v41_v13, %v57_v8  ;;  %v62_v19 = vrot.slane %v41_v13, %v61_v9  ;;  %v66_v20 = vrot.slane %v41_v13, %v65_v10  ;;  %v70_v21 = vrot.slane %v41_v13, %v69_v11 }
  0x2c   :  { %v74_v22 = vrot.slane %v41_v13, %v73_v12  ;;  %v75_v23 = vcombine.low %v46_v15, %v50_v16 }
  0x2d   :  { %v76_v24 = vcombine.low %v54_v17, %v58_v18  ;;  %v92_v25 = vcombine.low %v62_v19, %v66_v20 }
  0x2e   :  { %v93_v26 = vcombine.low %v70_v21, %v74_v22  ;;  %v83_v27 = vrot.slane %v75_v23, %v82_v14 }
  0x2f   :  { %v90_v28 = vrot.slane %v76_v24, %v82_v14  ;;  %v100_v30 = vrot.slane %v92_v25, %v82_v14 }
  0x30   :  { %v107_v31 = vrot.slane %v93_v26, %v82_v14 }
  0x31   :  { %v91_v33 = vcombine.low %v83_v27, %v90_v28 }
  0x32   :  { %v108_v34 = vcombine.low %v100_v30, %v107_v31 }
  0x33   :  { %v111_v35 = vmul.f32 %v91_v33, %v39_v29 }
  0x34   :  { %v112_v36 = vmul.f32 %v108_v34, %v40_v32 }
  0x35   :  { %v115_v37 = vcombine.high %v111_v35, %v111_v35  ;;  %v122_v38 = vrot.slane %v111_v35, %v82_v14 }
  0x36   :  { %v132_v39 = vcombine.high %v112_v36, %v112_v36  ;;  %v139_v42 = vrot.slane %v112_v36, %v82_v14 }
  0x37   :  { %v129_v40 = vrot.slane %v115_v37, %v82_v14  ;;  %v130_v41 = vcombine.high %v122_v38, %v122_v38  ;;  %v158_v43 = vsel %vm157_vm0, %v122_v38, 0.0 }
  0x38   :  { %v146_v48 = vrot.slane %v132_v39, %v82_v14  ;;  %v147_v49 = vcombine.high %v139_v42, %v139_v42  ;;  %v165_v52 = vsel %vm157_vm0, %v139_v42, 0.0 }
  0x39   :  { %v131_v44 = vcombine.high %v129_v40, %v129_v40  ;;  %v159_v45 = vsel %vm157_vm0, %v130_v41, 0.0  ;;  %v161_v46 = vsel %vm157_vm0, %v129_v40, 0.0 }
  0x3a   :  { %v160_v47 = vadd.f32 %v159_v45, %v158_v43  ;;  %v148_v54 = vcombine.high %v146_v48, %v146_v48  ;;  %v167_v55 = vsel %vm157_vm0, %v147_v49, 0.0  ;;  %v169_v57 = vsel %vm157_vm0, %v146_v48, 0.0 }
  0x3b   :  { %v163_v50 = vsel %vm157_vm0, %v131_v44, 0.0 }
  0x3c   :  { %v162_v51 = vadd.f32 %v161_v46, %v160_v47  ;;  %v171_v59 = vsel %vm157_vm0, %v148_v54, 0.0 }
  0x3e   :  { %v164_v53 = vadd.f32 %v163_v50, %v162_v51 }
  0x40   :  { %v166_v56 = vadd.f32 %v165_v52, %v164_v53 }
  0x42   :  { %v168_v58 = vadd.f32 %v167_v55, %v166_v56 }
  0x44   :  { %v170_v60 = vadd.f32 %v169_v57, %v168_v58 }
  0x46   :  { %v172_v61 = vadd.f32 %v171_v59, %v170_v60 }
  0x48   :  { %173 = vadd.xlane.f32.xlu0 %v172_v61 }
  0xd5   :  { %v174_v63 = vpop.xlane.xlu0 %173 }
  0xd6   :  { %v177_v0 = vadd.f32 %v176_v62, %v174_v63 }
  0xd8   :  { %v178_v1 = vsub.f32 0.0, %v177_v0 }
  0xda   :  { %v179_v2 = vmul.f32 1.442695, %v178_v1 }
  0xdc   :  { %195 = vpow2.f32 %v179_v2 }
  0xe6   :  { %v196_v3 = vpop.eup %195 }
  0xe7   :  { %v181_v4 = vadd.f32 1.0, %v196_v3 }
  0xe9   :  { %197 = vrcp.f32 %v181_v4 }
  0xf3   :  { %v198_v5 = vpop.eup %197 }
  0xf4   :  { %185 = vst.msk [vmem:[%s311_s3] sm:$0x3] %vm184_vm1, %v198_v5 }
  0xf5   :  { %190 = vsyncpa [#allocation4], 1 }
  0xf6   :  { %191 = vsyncpa [#allocation6], 1 }

</bundles_post_ra>
